<compile_context>
chip_gen: v7x
topology: tpu7x:2x2x1
jax: 0.10.0
libtpu: 0.0.40
codegen_flags: <defaults>
</compile_context>

<pallas_src>
import functools
import math

import jax
import jax.numpy as jnp
from jax import lax
from jax.experimental import pallas as pl
from jax.experimental.pallas import tpu as pltpu


def _round_up(x, m):
    return (x + m - 1) // m * m


def _vmem_budget_bytes():
    """~78% of physical per-core VMEM (v7x 64MiB -> ~50MiB, v5e/v6e 128MiB -> ~100MiB)."""
    try:
        cap = int(pltpu.get_tpu_info().vmem_capacity_bytes)
        if cap <= 0:
            cap = 64 << 20
    except Exception:
        cap = 64 << 20  # v7x-safe fallback
    return int(cap * 0.78)


def _pick_tiles(k_nbrs, c_in_p, c_out_s, isz_in, isz_out, max_pool, budget):
    """Pick (TCO, C_out_p, TN) so double-buffered blocks + f32 temps fit VMEM."""
    usable = max(budget - (10 << 20), 6 << 20)          # headroom for compiler scratch
    if c_out_s <= 256:
        tco_cands = [c_out_s]
    else:
        tco_cands = ([256] if c_out_s % 256 == 0 else []) + [128]
    for tco in tco_cands:
        c_out_p = _round_up(c_out_s, tco)
        for tn in (2048, 1024, 512, 256, 128):
            x_blk = 2 * k_nbrs * c_in_p * tn * isz_in                  # double-buffered x
            w_blk = 2 * c_out_p * c_in_p * isz_in + 4 * c_out_p * 4    # resident w + scale/shift
            out_elems = (tco * tn) if max_pool else (k_nbrs * tco * tn)
            out_blk = 2 * out_elems * isz_out                          # double-buffered out
            temps = (3 * tco + 2 * c_in_p) * tn * 4                    # f32 in-kernel temporaries
            if x_blk + w_blk + out_blk + temps <= usable:
                return tco, c_out_p, tn
    tco = 128 if c_out_s > 256 else c_out_s
    return tco, _round_up(c_out_s, tco), 128


# -----------------------------------------------------------------------------
# Pass 1: per-batch centered statistics  sum(z), Gram = sum z z^T,  z = x - c
# -----------------------------------------------------------------------------
def _stats_kernel(x_ref, g_ref, s_ref, c_ref, *, k_nbrs, c_in_p, inv_first_count):
    # x_ref: (K*C_in_p, TN)  g_ref: (C_in_p, C_in_p)  s_ref/c_ref: (C_in_p, 1)
    @pl.when(pl.program_id(1) == 0)
    def _():
        acc = jnp.zeros((c_in_p, 1), jnp.float32)
        for k in range(k_nbrs):
            xk = x_ref[pl.ds(k * c_in_p, c_in_p), :].astype(jnp.float32)
            acc = acc + jnp.sum(xk, axis=1, keepdims=True)
        c_ref[...] = acc * inv_first_count          # centering shift (per channel)
        g_ref[...] = jnp.zeros_like(g_ref)
        s_ref[...] = jnp.zeros_like(s_ref)

    c = c_ref[...]                                   # resident across N-tiles
    g = jnp.zeros(g_ref.shape, jnp.float32)
    s = jnp.zeros(s_ref.shape, jnp.float32)
    for k in range(k_nbrs):                          # K is small: unroll
        zk = x_ref[pl.ds(k * c_in_p, c_in_p), :].astype(jnp.float32) - c
        # z @ z^T on the MXU (contract the lane axis of both operands).
        g = g + lax.dot_general(zk, zk, (((1,), (1,)), ((), ())),
                                preferred_element_type=jnp.float32)
        s = s + jnp.sum(zk, axis=1, keepdims=True)
    g_ref[...] += g
    s_ref[...] += s


# -----------------------------------------------------------------------------
# Pass 2: tiled  conv(1x1) -> [max over K] -> scale/shift -> LeakyReLU
# -----------------------------------------------------------------------------
def _edgeconv_kernel(x_ref, w_ref, sc_ref, sh_ref, o_ref, *, k_nbrs, c_in_p,
                     tco, neg_slope, mode):
    # x_ref: (K*C_in_p, TN)   w_ref: (C_out_p, C_in_p) resident
    # sc_ref/sh_ref: (C_out_p, 1) f32 resident per batch
    # o_ref: (TCO, TN) for pooled modes, (K, TCO, TN) for "no_pool"
    co = pl.multiple_of(pl.program_id(2) * tco, tco)
    w = w_ref[pl.ds(co, tco), :]                       # (TCO, C_in_p)
    scale = sc_ref[pl.ds(co, tco), :]                  # (TCO, 1) f32
    shift = sh_ref[pl.ds(co, tco), :]

    if mode == "max_hoist":
        # max over raw MXU outputs, then one affine + LeakyReLU on the result.
        # Valid because scale >= 0 (gamma is None) and LeakyReLU is monotone.
        m = None
        for k in range(k_nbrs):
            xk = x_ref[pl.ds(k * c_in_p, c_in_p), :]                     # lane-dense
            yk = jnp.dot(w, xk, preferred_element_type=jnp.float32)     # MXU, f32 acc
            m = yk if m is None else jnp.maximum(m, yk)
        m = m * scale + shift
        m = jnp.maximum(m, neg_slope * m)              # LeakyReLU, 0<=slope<=1
        o_ref[...] = m.astype(o_ref.dtype)
    else:
        m = None
        for k in range(k_nbrs):
            xk = x_ref[pl.ds(k * c_in_p, c_in_p), :]
            yk = jnp.dot(w, xk, preferred_element_type=jnp.float32)
            yk = yk * scale + shift
            yk = jnp.maximum(yk, neg_slope * yk)
            if mode == "max_perk":                     # max_pool with possibly gamma<0
                m = yk if m is None else jnp.maximum(m, yk)
            else:                                      # "no_pool"
                o_ref[k] = yk.astype(o_ref.dtype)
        if mode == "max_perk":
            o_ref[...] = m.astype(o_ref.dtype)


# -----------------------------------------------------------------------------
# Wrapper
# -----------------------------------------------------------------------------
def edgeconv_forward(x, weight, *, max_pool=True, knn=None, eps=1e-5,
                     neg_slope=0.2, gamma=None, beta=None,
                     x_kmajor=False, use_bf16_matmul=False):
    """x: (B, C_in, N, K) NCHW (or (B, K, C_in, N) if x_kmajor=True).
    weight: (C_out, C_in) or (C_out, C_in, 1, 1)."""
    if knn is not None:
        # TODO(synk): KNNGraph stage not available in the reference source.
        raise NotImplementedError("KNNGraph stage not translated")

    if x_kmajor:
        B, K, C_in, N = x.shape
    else:
        B, C_in, N, K = x.shape
    weight = weight.reshape(weight.shape[0], -1)
    C_out = weight.shape[0]
    out_dtype = x.dtype
    cdt = jnp.bfloat16 if use_bf16_matmul else out_dtype
    isz_in = jnp.dtype(cdt).itemsize
    isz_out = jnp.dtype(out_dtype).itemsize

    # ---- padded / tiled geometry (dtype-aware sublane packing: 8/16/32) -----
    sub = max(8, 32 // isz_in)
    C_in_p = _round_up(C_in, sub)
    C_out_s = _round_up(C_out, sub)

    budget = _vmem_budget_bytes()
    TCO, C_out_p, TN = _pick_tiles(K, C_in_p, C_out_s, isz_in, isz_out,
                                   max_pool, budget)
    N_128 = _round_up(N, 128)
    if N_128 <= TN:
        TN = N_128
        N_p = N_128
    else:
        N_p = _round_up(N, TN)
    n_nt = N_p // TN
    n_co = C_out_p // TCO

    # ---- K-major / channel-minor lane-dense layout ---------------------------
    # x[b, c, n, k] -> xk[b, k*C_in_p + c, n]  (zero-padded channels / points)
    if x_kmajor:
        xk = x                                                 # already (B, K, C_in, N)
    else:
        # TODO(synk): fusing this relayout into Pass 1 would save one HBM round
        # trip; kept as a single XLA transpose for now.
        xk = jnp.transpose(x, (0, 3, 1, 2))                    # (B, K, C_in, N)
    xk = jnp.pad(xk, ((0, 0), (0, 0), (0, C_in_p - C_in), (0, N_p - N)))
    xk = xk.reshape(B, K * C_in_p, N_p).astype(cdt)

    w_p = jnp.pad(weight, ((0, C_out_p - C_out), (0, C_in_p - C_in))).astype(cdt)

    # ---- Pass 1: centered statistics -----------------------------------------
    inv_first_count = 1.0 / float(K * min(TN, N))              # real entries in tile 0
    g, sx, csh = pl.pallas_call(
        functools.partial(_stats_kernel, k_nbrs=K, c_in_p=C_in_p,
                          inv_first_count=inv_first_count),
        out_shape=(jax.ShapeDtypeStruct((B, C_in_p, C_in_p), jnp.float32),
                   jax.ShapeDtypeStruct((B, C_in_p, 1), jnp.float32),
                   jax.ShapeDtypeStruct((B, C_in_p, 1), jnp.float32)),
        grid_spec=pltpu.PrefetchScalarGridSpec(
            num_scalar_prefetch=0,
            grid=(B, n_nt),
            in_specs=[pl.BlockSpec((None, K * C_in_p, TN),
                                   lambda b, t: (b, 0, t))],
            out_specs=(pl.BlockSpec((None, C_in_p, C_in_p), lambda b, t: (b, 0, 0)),
                       pl.BlockSpec((None, C_in_p, 1), lambda b, t: (b, 0, 0)),
                       pl.BlockSpec((None, C_in_p, 1), lambda b, t: (b, 0, 0)))),
        compiler_params=pltpu.CompilerParams(
            dimension_semantics=("parallel", "arbitrary"),
            vmem_limit_bytes=budget),
        cost_estimate=pl.CostEstimate(
            flops=int(2 * B * K * N_p * C_in_p * C_in_p + 3 * B * K * N_p * C_in_p),
            transcendentals=0,
            bytes_accessed=int(B * K * C_in_p * N_p * isz_in
                               + B * C_in_p * (C_in_p + 2) * 4)),
    )(xk)

    # ---- fold InstanceNorm (+ optional affine) into per-channel scale/shift ----
    # Padded (zero) entries were centered to -c; correct analytically.
    nk = float(N * K)
    P = float((N_p - N) * K)
    c0 = csh[..., 0]                                           # (B, C_in_p)
    sum_z = sx[..., 0] + P * c0
    mean_z = sum_z / nk
    mean_x = c0 + mean_z
    g_real = g - P * (c0[:, :, None] * c0[:, None, :])
    cov = g_real / nk - mean_z[:, :, None] * mean_z[:, None, :]

    wf = jnp.pad(weight, ((0, C_out_p - C_out), (0, C_in_p - C_in))).astype(jnp.float32)
    mean_y = jnp.einsum('oc,bc->bo', wf, mean_x)               # (B, C_out_p)
    var_y = jnp.maximum(jnp.einsum('bij,oi,oj->bo', cov, wf, wf), 0.0)
    inv_std = lax.rsqrt(var_y + eps)
    scale = inv_std
    shift = -mean_y * inv_std
    if gamma is not None:                                      # InstanceNorm2d affine=True
        gpad = jnp.pad(gamma.astype(jnp.float32).reshape(-1), (0, C_out_p - C_out))
        scale = scale * gpad
        shift = shift * gpad
    if beta is not None:
        bpad = jnp.pad(beta.astype(jnp.float32).reshape(-1), (0, C_out_p - C_out))
        shift = shift + bpad
    scale = scale[..., None].astype(jnp.float32)               # (B, C_out_p, 1)
    shift = shift[..., None].astype(jnp.float32)

    if not max_pool:
        mode = "no_pool"
    elif gamma is None:
        mode = "max_hoist"       # scale = inv_std >= 0: hoist norm+LeakyReLU past the K-max
    else:
        mode = "max_perk"        # gamma may be negative -> cannot hoist

    # ---- Pass 2: main kernel ----------------------------------------------------
    if max_pool:
        out_struct = jax.ShapeDtypeStruct((B, C_out_p, N_p), out_dtype)
        out_spec = pl.BlockSpec((None, TCO, TN), lambda b, t, c: (b, c, t))
        out_bytes = B * C_out_p * N_p * isz_out
    else:
        out_struct = jax.ShapeDtypeStruct((B, K, C_out_p, N_p), out_dtype)
        out_spec = pl.BlockSpec((None, K, TCO, TN), lambda b, t, c: (b, 0, c, t))
        out_bytes = B * K * C_out_p * N_p * isz_out

    out = pl.pallas_call(
        functools.partial(_edgeconv_kernel, k_nbrs=K, c_in_p=C_in_p, tco=TCO,
                          neg_slope=float(neg_slope), mode=mode),
        out_shape=out_struct,
        grid_spec=pltpu.PrefetchScalarGridSpec(
            num_scalar_prefetch=0,
            # C_out-tile axis innermost: x / w / scale / shift block indices are
            # independent of it, so no re-DMA across C_out tiles.
            grid=(B, n_nt, n_co),
            in_specs=[
                pl.BlockSpec((None, K * C_in_p, TN), lambda b, t, c: (b, 0, t)),
                pl.BlockSpec((C_out_p, C_in_p), lambda b, t, c: (0, 0)),      # resident
                pl.BlockSpec((None, C_out_p, 1), lambda b, t, c: (b, 0, 0)),  # resident/batch
                pl.BlockSpec((None, C_out_p, 1), lambda b, t, c: (b, 0, 0)),
            ],
            out_specs=out_spec),
        compiler_params=pltpu.CompilerParams(
            dimension_semantics=("parallel", "parallel", "parallel"),
            vmem_limit_bytes=budget),
        cost_estimate=pl.CostEstimate(
            flops=int(2 * B * K * N_p * C_out_p * C_in_p + 4 * B * N_p * C_out_p),
            transcendentals=0,
            bytes_accessed=int(B * K * C_in_p * N_p * isz_in
                               + C_out_p * C_in_p * isz_in
                               + 2 * B * C_out_p * 4 + out_bytes)),
    )(xk, w_p, scale, shift)

    if max_pool:
        return out[:, :C_out, :N]                    # (B, C_out, N)
    out = out[:, :, :C_out, :N]                      # (B, K, C_out, N)
    return jnp.transpose(out, (0, 2, 3, 1))          # (B, C_out, N, K)


# -----------------------------------------------------------------------------
# Pure-JAX reference (mirrors PyTorch Conv2d(1x1,bias=False) -> InstanceNorm2d
# -> LeakyReLU(0.2) -> max over the neighbor axis)
# -----------------------------------------------------------------------------
def _reference(x, weight, *, max_pool=True, eps=1e-5, neg_slope=0.2):
    y = jnp.einsum('oc,bcnk->bonk', weight, x)
    mean = jnp.mean(y, axis=(2, 3), keepdims=True)
    var = jnp.mean((y - mean) ** 2, axis=(2, 3), keepdims=True)
    y = (y - mean) / jnp.sqrt(var + eps)
    y = jnp.where(y >= 0, y, neg_slope * y)
    if max_pool:
        y = jnp.max(y, axis=-1)
    return y


if __name__ == "__main__":
    B, C_in, C_out, N, K = 2, 8, 32, 16, 8

    key = jax.random.PRNGKey(0)
    kx, kw = jax.random.split(key)
    x = jax.random.normal(kx, (B, C_in, N, K), dtype=jnp.float32)
    # Deterministic synthetic 1x1 conv weight (kernel_size=1 -> (C_out, C_in)).
    weight = 0.1 * jax.random.normal(kw, (C_out, C_in), dtype=jnp.float32)

    # maxPool=True path (hoisted norm/LeakyReLU past the K-max)
    out = edgeconv_forward(x, weight, max_pool=True, knn=None)
    out = jax.block_until_ready(out)
    ref = _reference(x, weight, max_pool=True)
    assert out.shape == (B, C_out, N), out.shape
    assert jnp.allclose(out, ref, atol=1e-3, rtol=1e-3), \
        float(jnp.max(jnp.abs(out - ref)))

    # maxPool=False path
    out2 = edgeconv_forward(x, weight, max_pool=False, knn=None)
    out2 = jax.block_until_ready(out2)
    ref2 = _reference(x, weight, max_pool=False)
    assert out2.shape == (B, C_out, N, K), out2.shape
    assert jnp.allclose(out2, ref2, atol=1e-3, rtol=1e-3), \
        float(jnp.max(jnp.abs(out2 - ref2)))

    # Large per-channel mean offsets: exercises the centered statistics and the
    # zero-padding correction (N padded 16 -> 128).
    offsets = jnp.linspace(20.0, 60.0, C_in, dtype=jnp.float32)
    x_off = x + offsets[None, :, None, None]
    out3 = jax.block_until_ready(edgeconv_forward(x_off, weight, max_pool=True))
    ref3 = _reference(x_off, weight, max_pool=True)
    assert jnp.allclose(out3, ref3, atol=5e-3, rtol=5e-3), \
        float(jnp.max(jnp.abs(out3 - ref3)))

    # Opt-in bf16 matmul fast path (loose tolerance: bf16 operands).
    out4 = jax.block_until_ready(
        edgeconv_forward(x, weight, max_pool=True, use_bf16_matmul=True))
    assert out4.shape == (B, C_out, N), out4.shape
    assert jnp.allclose(out4, ref, atol=1e-1, rtol=1e-1), \
        float(jnp.max(jnp.abs(out4 - ref)))

    print("KERNEL_OK")
</pallas_src>

<mosaic_0001>
module attributes {stable_mosaic.version = 11 : i64} {
  func.func @_stats_kernel(%arg0: i32, %arg1: i32, %arg2: memref<1x64x128xf32, #tpu.memory_space<vmem>>, %arg3: memref<1x8x8xf32, #tpu.memory_space<vmem>>, %arg4: memref<1x8x1xf32, #tpu.memory_space<vmem>>, %arg5: memref<1x8x1xf32, #tpu.memory_space<vmem>>) attributes {dimension_semantics = [#tpu.dimension_semantics<parallel>, #tpu.dimension_semantics<arbitrary>], iteration_bounds = array<i64: 2, 1>, scalar_prefetch = 0 : i64, scratch_operands = 0 : i64, tpu.core_type = #tpu.core_type<tc>, window_params = [{transform_indices = @transform_0, window_bounds = array<i64: 1, 64, 128>}, {transform_indices = @transform_1, window_bounds = array<i64: 1, 8, 8>}, {transform_indices = @transform_2, window_bounds = array<i64: 1, 8, 1>}, {transform_indices = @transform_3, window_bounds = array<i64: 1, 8, 1>}]} {
    %c0_i32 = arith.constant 0 : i32
    %0 = arith.cmpi eq, %arg1, %c0_i32 : i32
    %1 = arith.extui %0 : i1 to i32
    %c0_i32_0 = arith.constant 0 : i32
    %2 = arith.cmpi ne, %1, %c0_i32_0 : i32
    scf.if %2 {
      %cst_49 = arith.constant 0.000000e+00 : f32
      %91 = vector.broadcast %cst_49 : f32 to vector<8x1xf32>
      %c0_50 = arith.constant 0 : index
      %c0_51 = arith.constant 0 : index
      %c0_52 = arith.constant 0 : index
      %92 = vector.load %arg2[%c0_50, %c0_51, %c0_52] : memref<1x64x128xf32, #tpu.memory_space<vmem>>, vector<1x8x128xf32>
      %93 = vector.shape_cast %92 : vector<1x8x128xf32> to vector<8x128xf32>
      %cst_53 = arith.constant dense<0.000000e+00> : vector<8xf32>
      %94 = vector.multi_reduction <add>, %93, %cst_53 [1] : vector<8x128xf32> to vector<8xf32>
      %95 = vector.shape_cast %94 : vector<8xf32> to vector<8x1xf32>
      %96 = arith.addf %91, %95 : vector<8x1xf32>
      %c0_54 = arith.constant 0 : index
      %c8_55 = arith.constant 8 : index
      %c0_56 = arith.constant 0 : index
      %97 = vector.load %arg2[%c0_54, %c8_55, %c0_56] : memref<1x64x128xf32, #tpu.memory_space<vmem>>, vector<1x8x128xf32>
      %98 = vector.shape_cast %97 : vector<1x8x128xf32> to vector<8x128xf32>
      %cst_57 = arith.constant dense<0.000000e+00> : vector<8xf32>
      %99 = vector.multi_reduction <add>, %98, %cst_57 [1] : vector<8x128xf32> to vector<8xf32>
      %100 = vector.shape_cast %99 : vector<8xf32> to vector<8x1xf32>
      %101 = arith.addf %96, %100 : vector<8x1xf32>
      %c0_58 = arith.constant 0 : index
      %c16_59 = arith.constant 16 : index
      %c0_60 = arith.constant 0 : index
      %102 = vector.load %arg2[%c0_58, %c16_59, %c0_60] : memref<1x64x128xf32, #tpu.memory_space<vmem>>, vector<1x8x128xf32>
      %103 = vector.shape_cast %102 : vector<1x8x128xf32> to vector<8x128xf32>
      %cst_61 = arith.constant dense<0.000000e+00> : vector<8xf32>
      %104 = vector.multi_reduction <add>, %103, %cst_61 [1] : vector<8x128xf32> to vector<8xf32>
      %105 = vector.shape_cast %104 : vector<8xf32> to vector<8x1xf32>
      %106 = arith.addf %101, %105 : vector<8x1xf32>
      %c0_62 = arith.constant 0 : index
      %c24_63 = arith.constant 24 : index
      %c0_64 = arith.constant 0 : index
      %107 = vector.load %arg2[%c0_62, %c24_63, %c0_64] : memref<1x64x128xf32, #tpu.memory_space<vmem>>, vector<1x8x128xf32>
      %108 = vector.shape_cast %107 : vector<1x8x128xf32> to vector<8x128xf32>
      %cst_65 = arith.constant dense<0.000000e+00> : vector<8xf32>
      %109 = vector.multi_reduction <add>, %108, %cst_65 [1] : vector<8x128xf32> to vector<8xf32>
      %110 = vector.shape_cast %109 : vector<8xf32> to vector<8x1xf32>
      %111 = arith.addf %106, %110 : vector<8x1xf32>
      %c0_66 = arith.constant 0 : index
      %c32_67 = arith.constant 32 : index
      %c0_68 = arith.constant 0 : index
      %112 = vector.load %arg2[%c0_66, %c32_67, %c0_68] : memref<1x64x128xf32, #tpu.memory_space<vmem>>, vector<1x8x128xf32>
      %113 = vector.shape_cast %112 : vector<1x8x128xf32> to vector<8x128xf32>
      %cst_69 = arith.constant dense<0.000000e+00> : vector<8xf32>
      %114 = vector.multi_reduction <add>, %113, %cst_69 [1] : vector<8x128xf32> to vector<8xf32>
      %115 = vector.shape_cast %114 : vector<8xf32> to vector<8x1xf32>
      %116 = arith.addf %111, %115 : vector<8x1xf32>
      %c0_70 = arith.constant 0 : index
      %c40_71 = arith.constant 40 : index
      %c0_72 = arith.constant 0 : index
      %117 = vector.load %arg2[%c0_70, %c40_71, %c0_72] : memref<1x64x128xf32, #tpu.memory_space<vmem>>, vector<1x8x128xf32>
      %118 = vector.shape_cast %117 : vector<1x8x128xf32> to vector<8x128xf32>
      %cst_73 = arith.constant dense<0.000000e+00> : vector<8xf32>
      %119 = vector.multi_reduction <add>, %118, %cst_73 [1] : vector<8x128xf32> to vector<8xf32>
      %120 = vector.shape_cast %119 : vector<8xf32> to vector<8x1xf32>
      %121 = arith.addf %116, %120 : vector<8x1xf32>
      %c0_74 = arith.constant 0 : index
      %c48_75 = arith.constant 48 : index
      %c0_76 = arith.constant 0 : index
      %122 = vector.load %arg2[%c0_74, %c48_75, %c0_76] : memref<1x64x128xf32, #tpu.memory_space<vmem>>, vector<1x8x128xf32>
      %123 = vector.shape_cast %122 : vector<1x8x128xf32> to vector<8x128xf32>
      %cst_77 = arith.constant dense<0.000000e+00> : vector<8xf32>
      %124 = vector.multi_reduction <add>, %123, %cst_77 [1] : vector<8x128xf32> to vector<8xf32>
      %125 = vector.shape_cast %124 : vector<8xf32> to vector<8x1xf32>
      %126 = arith.addf %121, %125 : vector<8x1xf32>
      %c0_78 = arith.constant 0 : index
      %c56_79 = arith.constant 56 : index
      %c0_80 = arith.constant 0 : index
      %127 = vector.load %arg2[%c0_78, %c56_79, %c0_80] : memref<1x64x128xf32, #tpu.memory_space<vmem>>, vector<1x8x128xf32>
      %128 = vector.shape_cast %127 : vector<1x8x128xf32> to vector<8x128xf32>
      %cst_81 = arith.constant dense<0.000000e+00> : vector<8xf32>
      %129 = vector.multi_reduction <add>, %128, %cst_81 [1] : vector<8x128xf32> to vector<8xf32>
      %130 = vector.shape_cast %129 : vector<8xf32> to vector<8x1xf32>
      %131 = arith.addf %126, %130 : vector<8x1xf32>
      %cst_82 = arith.constant 7.812500e-03 : f32
      %132 = vector.broadcast %cst_82 : f32 to vector<8x1xf32>
      %133 = arith.mulf %131, %132 : vector<8x1xf32>
      %c0_83 = arith.constant 0 : index
      %c0_84 = arith.constant 0 : index
      %c0_85 = arith.constant 0 : index
      %134 = vector.load %arg5[%c0_83, %c0_84, %c0_85] : memref<1x8x1xf32, #tpu.memory_space<vmem>>, vector<1x8x1xf32>
      %135 = vector.shape_cast %134 : vector<1x8x1xf32> to vector<8x1xf32>
      %136 = vector.shape_cast %133 : vector<8x1xf32> to vector<1x8x1xf32>
      tpu.vector_store %arg5[%c0_83, %c0_84, %c0_85], %136 {strides = array<i32>} : memref<1x8x1xf32, #tpu.memory_space<vmem>>, vector<1x8x1xf32>,
      %cst_86 = arith.constant 0.000000e+00 : f32
      %137 = vector.broadcast %cst_86 : f32 to vector<8x8xf32>
      %c0_87 = arith.constant 0 : index
      %c0_88 = arith.constant 0 : index
      %c0_89 = arith.constant 0 : index
      %138 = vector.load %arg3[%c0_87, %c0_88, %c0_89] : memref<1x8x8xf32, #tpu.memory_space<vmem>>, vector<1x8x8xf32>
      %139 = vector.shape_cast %138 : vector<1x8x8xf32> to vector<8x8xf32>
      %140 = vector.shape_cast %137 : vector<8x8xf32> to vector<1x8x8xf32>
      tpu.vector_store %arg3[%c0_87, %c0_88, %c0_89], %140 {strides = array<i32>} : memref<1x8x8xf32, #tpu.memory_space<vmem>>, vector<1x8x8xf32>,
      %cst_90 = arith.constant 0.000000e+00 : f32
      %141 = vector.broadcast %cst_90 : f32 to vector<8x1xf32>
      %c0_91 = arith.constant 0 : index
      %c0_92 = arith.constant 0 : index
      %c0_93 = arith.constant 0 : index
      %142 = vector.load %arg4[%c0_91, %c0_92, %c0_93] : memref<1x8x1xf32, #tpu.memory_space<vmem>>, vector<1x8x1xf32>
      %143 = vector.shape_cast %142 : vector<1x8x1xf32> to vector<8x1xf32>
      %144 = vector.shape_cast %141 : vector<8x1xf32> to vector<1x8x1xf32>
      tpu.vector_store %arg4[%c0_91, %c0_92, %c0_93], %144 {strides = array<i32>} : memref<1x8x1xf32, #tpu.memory_space<vmem>>, vector<1x8x1xf32>,
    } else {
    }
    %c0 = arith.constant 0 : index
    %c0_1 = arith.constant 0 : index
    %c0_2 = arith.constant 0 : index
    %3 = vector.load %arg5[%c0, %c0_1, %c0_2] : memref<1x8x1xf32, #tpu.memory_space<vmem>>, vector<1x8x1xf32>
    %4 = vector.shape_cast %3 : vector<1x8x1xf32> to vector<8x1xf32>
    %cst = arith.constant 0.000000e+00 : f32
    %5 = vector.broadcast %cst : f32 to vector<8x8xf32>
    %cst_3 = arith.constant 0.000000e+00 : f32
    %6 = vector.broadcast %cst_3 : f32 to vector<8x1xf32>
    %c0_4 = arith.constant 0 : index
    %c0_5 = arith.constant 0 : index
    %c0_6 = arith.constant 0 : index
    %7 = vector.load %arg2[%c0_4, %c0_5, %c0_6] : memref<1x64x128xf32, #tpu.memory_space<vmem>>, vector<1x8x128xf32>
    %8 = vector.shape_cast %7 : vector<1x8x128xf32> to vector<8x128xf32>
    %9 = vector.broadcast %4 : vector<8x1xf32> to vector<8x128xf32>
    %10 = arith.subf %8, %9 : vector<8x128xf32>
    %cst_7 = arith.constant dense<0.000000e+00> : vector<8x8xf32>
    %11 = tpu.matmul %10, %10, %cst_7 {dimension_numbers = #tpu.dot_dimension_numbers<[1], [1], [0], [0], [0, 0, 1, 0], [], []>} : vector<8x128xf32>, vector<8x128xf32>, vector<8x8xf32> -> vector<8x8xf32>
    %12 = arith.addf %5, %11 : vector<8x8xf32>
    %cst_8 = arith.constant dense<0.000000e+00> : vector<8xf32>
    %13 = vector.multi_reduction <add>, %10, %cst_8 [1] : vector<8x128xf32> to vector<8xf32>
    %14 = vector.shape_cast %13 : vector<8xf32> to vector<8x1xf32>
    %15 = arith.addf %6, %14 : vector<8x1xf32>
    %c0_9 = arith.constant 0 : index
    %c8 = arith.constant 8 : index
    %c0_10 = arith.constant 0 : index
    %16 = vector.load %arg2[%c0_9, %c8, %c0_10] : memref<1x64x128xf32, #tpu.memory_space<vmem>>, vector<1x8x128xf32>
    %17 = vector.shape_cast %16 : vector<1x8x128xf32> to vector<8x128xf32>
    %18 = vector.broadcast %4 : vector<8x1xf32> to vector<8x128xf32>
    %19 = arith.subf %17, %18 : vector<8x128xf32>
    %cst_11 = arith.constant dense<0.000000e+00> : vector<8x8xf32>
    %20 = tpu.matmul %19, %19, %cst_11 {dimension_numbers = #tpu.dot_dimension_numbers<[1], [1], [0], [0], [0, 0, 1, 0], [], []>} : vector<8x128xf32>, vector<8x128xf32>, vector<8x8xf32> -> vector<8x8xf32>
    %21 = arith.addf %12, %20 : vector<8x8xf32>
    %cst_12 = arith.constant dense<0.000000e+00> : vector<8xf32>
    %22 = vector.multi_reduction <add>, %19, %cst_12 [1] : vector<8x128xf32> to vector<8xf32>
    %23 = vector.shape_cast %22 : vector<8xf32> to vector<8x1xf32>
    %24 = arith.addf %15, %23 : vector<8x1xf32>
    %c0_13 = arith.constant 0 : index
    %c16 = arith.constant 16 : index
    %c0_14 = arith.constant 0 : index
    %25 = vector.load %arg2[%c0_13, %c16, %c0_14] : memref<1x64x128xf32, #tpu.memory_space<vmem>>, vector<1x8x128xf32>
    %26 = vector.shape_cast %25 : vector<1x8x128xf32> to vector<8x128xf32>
    %27 = vector.broadcast %4 : vector<8x1xf32> to vector<8x128xf32>
    %28 = arith.subf %26, %27 : vector<8x128xf32>
    %cst_15 = arith.constant dense<0.000000e+00> : vector<8x8xf32>
    %29 = tpu.matmul %28, %28, %cst_15 {dimension_numbers = #tpu.dot_dimension_numbers<[1], [1], [0], [0], [0, 0, 1, 0], [], []>} : vector<8x128xf32>, vector<8x128xf32>, vector<8x8xf32> -> vector<8x8xf32>
    %30 = arith.addf %21, %29 : vector<8x8xf32>
    %cst_16 = arith.constant dense<0.000000e+00> : vector<8xf32>
    %31 = vector.multi_reduction <add>, %28, %cst_16 [1] : vector<8x128xf32> to vector<8xf32>
    %32 = vector.shape_cast %31 : vector<8xf32> to vector<8x1xf32>
    %33 = arith.addf %24, %32 : vector<8x1xf32>
    %c0_17 = arith.constant 0 : index
    %c24 = arith.constant 24 : index
    %c0_18 = arith.constant 0 : index
    %34 = vector.load %arg2[%c0_17, %c24, %c0_18] : memref<1x64x128xf32, #tpu.memory_space<vmem>>, vector<1x8x128xf32>
    %35 = vector.shape_cast %34 : vector<1x8x128xf32> to vector<8x128xf32>
    %36 = vector.broadcast %4 : vector<8x1xf32> to vector<8x128xf32>
    %37 = arith.subf %35, %36 : vector<8x128xf32>
    %cst_19 = arith.constant dense<0.000000e+00> : vector<8x8xf32>
    %38 = tpu.matmul %37, %37, %cst_19 {dimension_numbers = #tpu.dot_dimension_numbers<[1], [1], [0], [0], [0, 0, 1, 0], [], []>} : vector<8x128xf32>, vector<8x128xf32>, vector<8x8xf32> -> vector<8x8xf32>
    %39 = arith.addf %30, %38 : vector<8x8xf32>
    %cst_20 = arith.constant dense<0.000000e+00> : vector<8xf32>
    %40 = vector.multi_reduction <add>, %37, %cst_20 [1] : vector<8x128xf32> to vector<8xf32>
    %41 = vector.shape_cast %40 : vector<8xf32> to vector<8x1xf32>
    %42 = arith.addf %33, %41 : vector<8x1xf32>
    %c0_21 = arith.constant 0 : index
    %c32 = arith.constant 32 : index
    %c0_22 = arith.constant 0 : index
    %43 = vector.load %arg2[%c0_21, %c32, %c0_22] : memref<1x64x128xf32, #tpu.memory_space<vmem>>, vector<1x8x128xf32>
    %44 = vector.shape_cast %43 : vector<1x8x128xf32> to vector<8x128xf32>
    %45 = vector.broadcast %4 : vector<8x1xf32> to vector<8x128xf32>
    %46 = arith.subf %44, %45 : vector<8x128xf32>
    %cst_23 = arith.constant dense<0.000000e+00> : vector<8x8xf32>
    %47 = tpu.matmul %46, %46, %cst_23 {dimension_numbers = #tpu.dot_dimension_numbers<[1], [1], [0], [0], [0, 0, 1, 0], [], []>} : vector<8x128xf32>, vector<8x128xf32>, vector<8x8xf32> -> vector<8x8xf32>
    %48 = arith.addf %39, %47 : vector<8x8xf32>
    %cst_24 = arith.constant dense<0.000000e+00> : vector<8xf32>
    %49 = vector.multi_reduction <add>, %46, %cst_24 [1] : vector<8x128xf32> to vector<8xf32>
    %50 = vector.shape_cast %49 : vector<8xf32> to vector<8x1xf32>
    %51 = arith.addf %42, %50 : vector<8x1xf32>
    %c0_25 = arith.constant 0 : index
    %c40 = arith.constant 40 : index
    %c0_26 = arith.constant 0 : index
    %52 = vector.load %arg2[%c0_25, %c40, %c0_26] : memref<1x64x128xf32, #tpu.memory_space<vmem>>, vector<1x8x128xf32>
    %53 = vector.shape_cast %52 : vector<1x8x128xf32> to vector<8x128xf32>
    %54 = vector.broadcast %4 : vector<8x1xf32> to vector<8x128xf32>
    %55 = arith.subf %53, %54 : vector<8x128xf32>
    %cst_27 = arith.constant dense<0.000000e+00> : vector<8x8xf32>
    %56 = tpu.matmul %55, %55, %cst_27 {dimension_numbers = #tpu.dot_dimension_numbers<[1], [1], [0], [0], [0, 0, 1, 0], [], []>} : vector<8x128xf32>, vector<8x128xf32>, vector<8x8xf32> -> vector<8x8xf32>
    %57 = arith.addf %48, %56 : vector<8x8xf32>
    %cst_28 = arith.constant dense<0.000000e+00> : vector<8xf32>
    %58 = vector.multi_reduction <add>, %55, %cst_28 [1] : vector<8x128xf32> to vector<8xf32>
    %59 = vector.shape_cast %58 : vector<8xf32> to vector<8x1xf32>
    %60 = arith.addf %51, %59 : vector<8x1xf32>
    %c0_29 = arith.constant 0 : index
    %c48 = arith.constant 48 : index
    %c0_30 = arith.constant 0 : index
    %61 = vector.load %arg2[%c0_29, %c48, %c0_30] : memref<1x64x128xf32, #tpu.memory_space<vmem>>, vector<1x8x128xf32>
    %62 = vector.shape_cast %61 : vector<1x8x128xf32> to vector<8x128xf32>
    %63 = vector.broadcast %4 : vector<8x1xf32> to vector<8x128xf32>
    %64 = arith.subf %62, %63 : vector<8x128xf32>
    %cst_31 = arith.constant dense<0.000000e+00> : vector<8x8xf32>
    %65 = tpu.matmul %64, %64, %cst_31 {dimension_numbers = #tpu.dot_dimension_numbers<[1], [1], [0], [0], [0, 0, 1, 0], [], []>} : vector<8x128xf32>, vector<8x128xf32>, vector<8x8xf32> -> vector<8x8xf32>
    %66 = arith.addf %57, %65 : vector<8x8xf32>
    %cst_32 = arith.constant dense<0.000000e+00> : vector<8xf32>
    %67 = vector.multi_reduction <add>, %64, %cst_32 [1] : vector<8x128xf32> to vector<8xf32>
    %68 = vector.shape_cast %67 : vector<8xf32> to vector<8x1xf32>
    %69 = arith.addf %60, %68 : vector<8x1xf32>
    %c0_33 = arith.constant 0 : index
    %c56 = arith.constant 56 : index
    %c0_34 = arith.constant 0 : index
    %70 = vector.load %arg2[%c0_33, %c56, %c0_34] : memref<1x64x128xf32, #tpu.memory_space<vmem>>, vector<1x8x128xf32>
    %71 = vector.shape_cast %70 : vector<1x8x128xf32> to vector<8x128xf32>
    %72 = vector.broadcast %4 : vector<8x1xf32> to vector<8x128xf32>
    %73 = arith.subf %71, %72 : vector<8x128xf32>
    %cst_35 = arith.constant dense<0.000000e+00> : vector<8x8xf32>
    %74 = tpu.matmul %73, %73, %cst_35 {dimension_numbers = #tpu.dot_dimension_numbers<[1], [1], [0], [0], [0, 0, 1, 0], [], []>} : vector<8x128xf32>, vector<8x128xf32>, vector<8x8xf32> -> vector<8x8xf32>
    %75 = arith.addf %66, %74 : vector<8x8xf32>
    %cst_36 = arith.constant dense<0.000000e+00> : vector<8xf32>
    %76 = vector.multi_reduction <add>, %73, %cst_36 [1] : vector<8x128xf32> to vector<8xf32>
    %77 = vector.shape_cast %76 : vector<8xf32> to vector<8x1xf32>
    %78 = arith.addf %69, %77 : vector<8x1xf32>
    %c0_37 = arith.constant 0 : index
    %c0_38 = arith.constant 0 : index
    %c0_39 = arith.constant 0 : index
    %79 = vector.load %arg3[%c0_37, %c0_38, %c0_39] : memref<1x8x8xf32, #tpu.memory_space<vmem>>, vector<1x8x8xf32>
    %80 = vector.shape_cast %79 : vector<1x8x8xf32> to vector<8x8xf32>
    %81 = arith.addf %80, %75 : vector<8x8xf32>
    %c0_40 = arith.constant 0 : index
    %c0_41 = arith.constant 0 : index
    %c0_42 = arith.constant 0 : index
    %82 = vector.load %arg3[%c0_40, %c0_41, %c0_42] : memref<1x8x8xf32, #tpu.memory_space<vmem>>, vector<1x8x8xf32>
    %83 = vector.shape_cast %82 : vector<1x8x8xf32> to vector<8x8xf32>
    %84 = vector.shape_cast %81 : vector<8x8xf32> to vector<1x8x8xf32>
    tpu.vector_store %arg3[%c0_40, %c0_41, %c0_42], %84 {strides = array<i32>} : memref<1x8x8xf32, #tpu.memory_space<vmem>>, vector<1x8x8xf32>,
    %c0_43 = arith.constant 0 : index
    %c0_44 = arith.constant 0 : index
    %c0_45 = arith.constant 0 : index
    %85 = vector.load %arg4[%c0_43, %c0_44, %c0_45] : memref<1x8x1xf32, #tpu.memory_space<vmem>>, vector<1x8x1xf32>
    %86 = vector.shape_cast %85 : vector<1x8x1xf32> to vector<8x1xf32>
    %87 = arith.addf %86, %78 : vector<8x1xf32>
    %c0_46 = arith.constant 0 : index
    %c0_47 = arith.constant 0 : index
    %c0_48 = arith.constant 0 : index
    %88 = vector.load %arg4[%c0_46, %c0_47, %c0_48] : memref<1x8x1xf32, #tpu.memory_space<vmem>>, vector<1x8x1xf32>
    %89 = vector.shape_cast %88 : vector<1x8x1xf32> to vector<8x1xf32>
    %90 = vector.shape_cast %87 : vector<8x1xf32> to vector<1x8x1xf32>
    tpu.vector_store %arg4[%c0_46, %c0_47, %c0_48], %90 {strides = array<i32>} : memref<1x8x1xf32, #tpu.memory_space<vmem>>, vector<1x8x1xf32>,
    return
  }
  func.func @transform_0(%arg0: i32, %arg1: i32) -> (i32, i32, i32) {
    %c0_i32 = arith.constant 0 : i32
    %c0_i32_0 = arith.constant 0 : i32
    return %arg0, %c0_i32, %arg1 : i32, i32, i32
  }
  func.func @transform_1(%arg0: i32, %arg1: i32) -> (i32, i32, i32) {
    %c0_i32 = arith.constant 0 : i32
    %c0_i32_0 = arith.constant 0 : i32
    %c0_i32_1 = arith.constant 0 : i32
    return %arg0, %c0_i32, %c0_i32_0 : i32, i32, i32
  }
  func.func @transform_2(%arg0: i32, %arg1: i32) -> (i32, i32, i32) {
    %c0_i32 = arith.constant 0 : i32
    %c0_i32_0 = arith.constant 0 : i32
    %c0_i32_1 = arith.constant 0 : i32
    return %arg0, %c0_i32, %c0_i32_0 : i32, i32, i32
  }
  func.func @transform_3(%arg0: i32, %arg1: i32) -> (i32, i32, i32) {
    %c0_i32 = arith.constant 0 : i32
    %c0_i32_0 = arith.constant 0 : i32
    %c0_i32_1 = arith.constant 0 : i32
    return %arg0, %c0_i32, %c0_i32_0 : i32, i32, i32
  }
}

</mosaic_0001>

<bundles_post_ra>
// kernel: tpu_custom_call.1
= control target key start
LH: loop header
LB: loop body
LE: loop exit
PB: predicated region body
PF: predicated region fallthrough
CT: control target
= control target key end

     0   :  { %9 = vsyncpa [#allocation3], 0  ;;  %s1541_s0 = inlined_call_operand.hbm [shape: f32[2,64,128], index: 0, kind: input, shape index: {}]   ;;  %s1542_s1 = inlined_call_operand.hbm [shape: f32[2,8,8], index: 1, kind: output, shape index: {0}]   ;;  %s1543_s2 = inlined_call_operand.vmem [shape: f32[2,8,1], index: 2, kind: output, shape index: {1}]   ;;  %s1544_s3 = inlined_call_operand.vmem [shape: f32[2,8,1], index: 3, kind: output, shape index: {2}]  }
   0x1   :  { %11 = vsyncpa [#allocation3 + $0x1], 0 }
   0x2   :  { %12 = vsyncpa [#allocation4], 0 }
   0x3   :  { %14 = vsyncpa [#allocation4 + $0x1], 0  ;;  %s1325_s12 = smov 0   ;;  %s1327_s13 = smov 0  }
   0x4   :  { %s1329_s14 = smov 0   ;;  %s1331_s15 = smov 0  }
   0x5   :  { %s1333_s16 = smov 0   ;;  %s1335_s17 = smov 0  }
   0x6 LB: > { %s1043_s18 = sadd.s32 4294967295, %s1296_s17   ;;  %s1044_s19 = sadd.s32 4294967294, %s1296_s17   ;;  %s1296_s17 = sphi %s1335_s17, %s20_s17   ;;  %s1292_s16 = sphi %s1333_s16, %s1559_s16   ;;  %s1288_s15 = sphi %s1331_s15, %s1558_s15   ;;  %s1284_s14 = sphi %s1329_s14, %s1557_s14   ;;  %s1280_s13 = sphi %s1327_s13, %s1556_s13   ;;  %s1276_s12 = sphi %s1325_s12, %s1555_s12  }
   0x7   : > { %s32_s20 = sadd.s32 1, %s1292_s16  ;;  %s41_s21 = sadd.s32 1, %s1284_s14 }
   0x8   : > { %p34_p0 = scmp.ge.s32.totalorder %s32_s20, 2  ;;  %p48_p1 = scmp.ne.s32.totalorder %s1284_s14, %s1280_s13 }
   0x9   : > { %p49_p2 = scmp.eq.s32.totalorder %s1296_s17, 0  ;;  %p54_p3 = scmp.ne.s32.totalorder %s1280_s13, %s1276_s12 }
   0xa   : > { %s1561_s20 = smov (%p34_p0, %s32_s20), 0  ;;  %p55_p5 = scmp.eq.s32.totalorder %s1043_s18, 0 }
   0xb   : > { %p1366_p4 = por %p49_p2, %p48_p1  ;;  %s36_s23 = ssub.s32 %s1292_s16, %s1561_s20 }
   0xc   : > { %p78_p6 = scmp.eq.s32.totalorder %s1043_s18, 1  ;;  %p39_p7 = scmp.eq.s32.totalorder %s36_s23, 0 }
   0xd   : > { %p1372_p8 = por %p55_p5, %p54_p3  ;;  %p84_p10 = scmp.eq.s32.totalorder %s1044_s19, 1 }
   0xe   : > { %p1376_p9 = por %p78_p6, %p48_p1  ;;  %p1128_p13 = scmp.lt.s32.totalorder %s1296_s17, 2 }
   0xf   : > { %s1381_s26 = scalar_select %p39_p7, %s1284_s14, %s41_s21  }
  0x10   : > { %s1548_s25 = scalar_select %p1376_p9, 1, 0 }
  0x11   : > { %p1383_p11 = por %p84_p10, %p54_p3  ;;  %s156_s28 = sand.u32 1, %s1284_s14  }
  0x12   : > { %s1047_s29 = sshll.u32 %s156_s28, 6  ;;  %s1059_s30 = sshll.u32 %s1292_s16, 10 }
  0x13   : > { %s1549_s27 = scalar_select %p1383_p11, 1, 0 }
  0x14   : > { %s1394_s6 = scalar_lea.hbm %s1541_s0, %s1059_s30  ;;  %s160_s7 = scalar_lea.vmem [#allocation2], %s1047_s29 }
  0x15   : > { %s168_s8 = sshll.u32 %s160_s7, 4  ;;  %p1400_p0 = pnand %p1128_p13, %p1366_p4  ;;  %s1396_s8 = int_to_ptr.vmem [resolvable:$true] %s168_s8 }
  0x16   : > { %s1405_s10 = scalar_lea.sflag [#allocation3], %s156_s28  ;;  %s1184_s11 = scalar_lea.hbm %s1394_s6, 1024 }
  0x17   : > { %p1185_p2 = scmp.ne.s32.totalorder %s1394_s6, %s1184_s11  ;;  %p1186_p3 = pneg %p1400_p0 }
  0x18   : > { %s1189_s21 = scalar_lea.hbm %s1541_s0, 2048  ;;  %p1190_p4 = scmp.lt.u32.totalorder %s1394_s6, %s1541_s0 }
  0x19   : > { %p1187_p5 = pnand %p1186_p3, %p1185_p2  ;;  %p1191_p7 = scmp.lt.u32.totalorder %s1189_s21, %s1184_s11 }
  0x1a   : > { %p1193_p13 = scmp.lt.u32.totalorder %s1184_s11, %s1394_s6 }
  0x1b   : > { %p1188_p6 = pneg %p1187_p5  ;;  %p1192_p10 = por %p1191_p7, %p1190_p4 }
  0x1d   : > { %p1194_p12 = por %p1193_p13, %p1192_p10 }
  0x1f   : > { %p1195_p1 = pnand %p1194_p12, %p1188_p6 }
  0x21   : > { %1198 = shalt.err (!%p1195_p1)
}
  0x22   : > { %s1199_s28 = scalar_lea.vmem %s1396_s8, 1024  ;;  %s1298_s29 = smov [#allocation2]  }
  0x23   : > { %p1200_p2 = scmp.ne.s32.totalorder %s1396_s8, %s1199_s28  ;;  %s1204_s30 = sshll.u32 %s1298_s29, 4  ;;  %s1205_s30 = int_to_ptr.vmem [resolvable:$false] %s1204_s30 }
  0x24   : > { %s1206_s4 = scalar_lea.vmem %s1205_s30, 2048  ;;  %p1207_p9 = scmp.lt.s32.totalorder %s1396_s8, %s1205_s30 }
  0x25   : > { %p1202_p5 = pnand %p1200_p2, %p1186_p3  ;;  %p1208_p4 = scmp.lt.s32.totalorder %s1206_s4, %s1199_s28 }
  0x27   : > { %p1203_p11 = pneg %p1202_p5  ;;  %p1209_p7 = por %p1208_p4, %p1207_p9 }
  0x29   : > { %p1210_p10 = pnand %p1209_p7, %p1203_p11 }
  0x2b   : > { %1213 = shalt.err (!%p1210_p10)
}
  0x2c   : > { %s1299_s5 = smov 128   ;;  %s1300_s7 = smov 8  }
  0x2d   : > { %1123 = dma.hbm_to_vmem [thread:$0]  (!%p1400_p0), %s1394_s6, 1024, %s1396_s8, %s1405_s10, %s1299_s5, %s1299_s5, %s1300_s7  }
  0x2e   : > { %p176_p12 = scmp.lt.s32.totalorder %s1296_s17, 3  ;;  %p1551_p1 = scmp.ge.s32.totalorder %s1296_s17, 1 }
  0x30   : > { %p177_p3 = pnand %p1551_p1, %p176_p12 }
  0x31   : > { %s1437_s11 = sand.u32 (!%p177_p3), 1, %s1280_s13  }
  0x32   : > { %180 = sbr.rel (%p177_p3) target bundleno = 607 (0x25f), region = 24  ;;  %s1051_s18 = sshll.u32 (!%p177_p3), %s1437_s11, 6 }
  0x33   : > { %s183_s19 = scalar_lea.sflag (!%p177_p3), [#allocation3], %s1437_s11  ;;  %s186_s21 = scalar_lea.vmem (!%p177_p3), [#allocation2], %s1051_s18 }
  0x39   : > { %1267 = dma.done.wait (%p1372_p8), %s183_s19, 1024  }
  0x3a   : > { %1269 = vsyncadd (%p1372_p8), %s183_s19, 4294966272  ;;  %v229_v0 = vld [vmem:[%s186_s21] sm:$0xff]  ;;  %v237_v1 = vld [vmem:[%s186_s21 + $0x10] sm:$0xff]  ;;  %v1301_v8 = vmov 0   ;;  %p217_p8 = scmp.lt.s32.totalorder %s1288_s15, 1  ;;  %vm262_vm0 = vcmask 7168  }
  0x3b   : > { %230 = vadd.xlane.f32.xlu0 %v229_v0  ;;  %238 = vadd.xlane.f32.xlu1 %v237_v1  ;;  %v233_v2 = vld [vmem:[%s186_s21 + $0x8] sm:$0xff]  ;;  %v241_v3 = vld [vmem:[%s186_s21 + $0x18] sm:$0xff]  ;;  %v245_v4 = vld [vmem:[%s186_s21 + $0x20] sm:$0xff]  ;;  %v1302_v26 = vmov 0.0   ;;  %vm1303_vm1 = vmmov 0   ;;  %s1052_s29 = sshll.u32 %s1437_s11, 3 }
  0x3c   : > { %v249_v5 = vld [vmem:[%s186_s21 + $0x28] sm:$0xff]  ;;  %v1445_v6 = vld [vmem:[%s186_s21 + $0x30] sm:$0xff]  ;;  %v1447_v7 = vld [vmem:[%s186_s21 + $0x38] sm:$0xff]  ;;  %1183 = vset.pattern.permute.xlu0 %v1301_v8  ;;  %s1453_s24 = scalar_select %p217_p8, %s1288_s15, 1  ;;  %1076 = vmatprep.subr.mxu0 %v1302_v26  ;;  %vm264_vm2 = vcmask 64512  }
  0x3d   : > { %1081 = vmatprep.subr.mxu1 %v1302_v26  ;;  %1078 = vmatprep.mubr.msk.f32.mxu0 %vm1303_vm1, %v1302_v26  ;;  %s1479_s30 = scalar_lea.vmem [#allocation5], %s1052_s29  ;;  %s1056_s4 = sshll.u32 %s1288_s15, 7 }
  0x3e   : > { %s1053_s6 = sshll.u32 %s1453_s24, 3  ;;  %1083 = vmatprep.mubr.msk.f32.mxu1 %vm1303_vm1, %v1302_v26  ;;  %265 = vst.msk [vmem:[%s1479_s30] sm:$0xff] %vm264_vm2, %v1302_v26  ;;  %s909_s5 = sshll.u32 %s1479_s30, 4  ;;  %s1492_s5 = int_to_ptr.vmem [resolvable:$true] %s909_s5 }
  0x3f   : > { %234 = vadd.xlane.f32.xlu0 %v233_v2  ;;  %242 = vadd.xlane.f32.xlu1 %v241_v3  ;;  %s224_s10 = scalar_lea.vmem %s1544_s3, %s1053_s6  ;;  %s220_s28 = scalar_lea.vmem %s1543_s2, %s1053_s6 }
  0x40   : > { %266 = vst.msk [vmem:[%s220_s28] sm:$0xff] %vm262_vm0, %v1302_v26  ;;  %s1490_s19 = scalar_lea.hbm %s1542_s1, %s1056_s4  ;;  %s888_s21 = scalar_lea.sflag [#allocation4], %s1437_s11 }
  0x41   : > { %s1214_s24 = scalar_lea.vmem %s1492_s5, 128  ;;  %p1552_p11 = scmp.ne.s32.totalorder %s1548_s25, 0 }
  0x42   : > { %p1215_p9 = scmp.ne.s32.totalorder %s1492_s5, %s1214_s24  ;;  %s1304_s15 = smov [#allocation5]  }
  0x43   : > { %246 = vadd.xlane.f32.xlu0 %v245_v4  ;;  %250 = vadd.xlane.f32.xlu1 %v249_v5  ;;  %s1218_s6 = sshll.u32 %s1304_s15, 4  ;;  %s1219_s6 = int_to_ptr.vmem [resolvable:$false] %s1218_s6 }
  0x44   : > { %p1216_p0 = pnand %p1215_p9, %p1552_p11  ;;  %s1220_s8 = scalar_lea.vmem %s1219_s6, 256 }
  0x45   : > { %p1221_p13 = scmp.lt.s32.totalorder %s1492_s5, %s1219_s6  ;;  %p1222_p2 = scmp.lt.s32.totalorder %s1220_s8, %s1214_s24 }
  0x46   : > { %p1217_p6 = pneg %p1216_p0 }
  0x47   : > { %254 = vadd.xlane.f32.xlu0 %v1445_v6  ;;  %258 = vadd.xlane.f32.xlu1 %v1447_v7  ;;  %v883_v49 = vld [vmem:[%s220_s28] sm:$0xff]  ;;  %p1223_p5 = por %p1222_p2, %p1221_p13 }
  0x49   : > { %p1224_p4 = pnand %p1223_p5, %p1217_p6 }
  0xc8   : > { %v231_v9 = vpop.xlane.xlu0 %230  ;;  %v239_v10 = vpop.xlane.xlu1 %238 }
  0xcc   : > { %v235_v11 = vpop.xlane.xlu0 %234  ;;  %v243_v12 = vpop.xlane.xlu1 %242 }
  0xcd   : > { %v236_v13 = vadd.f32 %v235_v11, %v231_v9 }
  0xcf   : > { %v240_v14 = vadd.f32 %v239_v10, %v236_v13  ;;  %v879_v10 = vld [vmem:[%s1479_s30] sm:$0xff] }
  0xd0   : > { %v247_v15 = vpop.xlane.xlu0 %246  ;;  %v251_v16 = vpop.xlane.xlu1 %250 }
  0xd1   : > { %v244_v17 = vadd.f32 %v243_v12, %v240_v14 }
  0xd3   : > { %v248_v18 = vadd.f32 %v247_v15, %v244_v17 }
  0xd4   : > { %v255_v19 = vpop.xlane.xlu0 %254  ;;  %v259_v21 = vpop.xlane.xlu1 %258 }
  0xd5   : > { %v252_v20 = vadd.f32 %v251_v16, %v248_v18 }
  0xd7   : > { %v256_v22 = vadd.f32 %v255_v19, %v252_v20 }
  0xd9   : > { %v260_v23 = vadd.f32 %v259_v21, %v256_v22 }
  0xdb   : > { %v261_v24 = vmul.f32 0.0078125, %v260_v23 }
  0xdd   : > { %263 = vst.msk [vmem:[%s224_s10] sm:$0xff] %vm262_vm0, %v261_v24 }
  0xe4   : > { %v267_v25 = vld [vmem:[%s224_s10] sm:$0xff] }
  0xe5   : > { %271 = vperm.xlu0 %1183, %v267_v25  }
 0x164   : > { %v272_v27 = vpop.permute.xlu0 %271 }
 0x165   : > { %v279_v28 = vsub.f32 %v233_v2, %v272_v27  ;;  %v274_v29 = vsub.f32 %v229_v0, %v272_v27  ;;  %v424_v30 = vsub.f32 %v237_v1, %v272_v27  ;;  %v500_v31 = vsub.f32 %v241_v3, %v272_v27 }
 0x166   : > { %v576_v32 = vsub.f32 %v245_v4, %v272_v27  ;;  %v652_v33 = vsub.f32 %v249_v5, %v272_v27  ;;  %v728_v34 = vsub.f32 %v1445_v6, %v272_v27  ;;  %v804_v35 = vsub.f32 %v1447_v7, %v272_v27 }
 0x167   : > { %1077 = vmatpush3.xpose.msra.mxu0 %v279_v28  ;;  %275 = vadd.xlane.f32.xlu1 %v274_v29 }
 0x168   : > { %1082 = vmatpush3.xpose.msra.mxu1 %v274_v29  ;;  %1086 = vmatprep.subr.mxu0 %v1302_v26 }
 0x169   : > { %1091 = vmatprep.subr.mxu1 %v1302_v26 }
 0x16a   : > { %1079 = vmatmul.mubr.f32.vlgmr.msra.gmra.mrb[0].mxu0 %v279_v28 }
 0x16b   : > { %1084 = vmatmul.mubr.f32.vlgmr.msra.gmra.mrb[0].mxu1 %v274_v29  ;;  %1087 = vmatpush3.xpose.msra.mxu0 %v424_v30 }
 0x16c   : > { %420 = vadd.xlane.f32.xlu1 %v279_v28  ;;  %1092 = vmatpush3.xpose.msra.mxu1 %v500_v31 }
 0x16d   : > { %1088 = vmatprep.mubr.msk.f32.mxu0 %vm1303_vm1, %v1302_v26  ;;  %1093 = vmatprep.mubr.msk.f32.mxu1 %vm1303_vm1, %v1302_v26 }
 0x16e   : > { %1089 = vmatmul.mubr.f32.vlgmr.msra.gmra.mrb[2].mxu0 %v424_v30  ;;  %1096 = vmatprep.subr.mxu0 %v1302_v26 }
 0x16f   : > { %1094 = vmatmul.mubr.f32.vlgmr.msra.gmra.mrb[2].mxu1 %v500_v31  ;;  %1101 = vmatprep.subr.mxu1 %v1302_v26 }
 0x170   : > { %1097 = vmatpush3.xpose.msra.mxu0 %v576_v32  ;;  %496 = vadd.xlane.f32.xlu1 %v424_v30 }
 0x171   : > { %1102 = vmatpush3.xpose.msra.mxu1 %v652_v33  ;;  %1098 = vmatprep.mubr.msk.f32.mxu0 %vm1303_vm1, %v1302_v26 }
 0x172   : > { %1103 = vmatprep.mubr.msk.f32.mxu1 %vm1303_vm1, %v1302_v26  ;;  %1106 = vmatprep.subr.mxu0 %v1302_v26 }
 0x173   : > { %1099 = vmatmul.mubr.f32.vlgmr.msra.gmra.mrb[4].mxu0 %v576_v32  ;;  %1111 = vmatprep.subr.mxu1 %v1302_v26 }
 0x174   : > { %1104 = vmatmul.mubr.f32.vlgmr.msra.gmra.mrb[4].mxu1 %v652_v33  ;;  %1107 = vmatpush3.xpose.msra.mxu0 %v728_v34 }
 0x175   : > { %572 = vadd.xlane.f32.xlu1 %v500_v31  ;;  %1112 = vmatpush3.xpose.msra.mxu1 %v804_v35 }
 0x176   : > { %1108 = vmatprep.mubr.msk.f32.mxu0 %vm1303_vm1, %v1302_v26  ;;  %1113 = vmatprep.mubr.msk.f32.mxu1 %vm1303_vm1, %v1302_v26 }
 0x177   : > { %1109 = vmatmul.mubr.f32.vlgmr.msra.gmra.mrb[6].mxu0 %v728_v34 }
 0x178   : > { %1114 = vmatmul.mubr.f32.vlgmr.msra.gmra.mrb[6].mxu1 %v804_v35 }
 0x179   : > { %648 = vadd.xlane.f32.xlu1 %v576_v32 }
 0x17d   : > { %724 = vadd.xlane.f32.xlu1 %v652_v33 }
 0x181   : > { %800 = vadd.xlane.f32.xlu1 %v728_v34 }
 0x185   : > { %876 = vadd.xlane.f32.xlu1 %v804_v35 }
 0x1f4   : > { %v276_v36 = vpop.xlane.xlu1 %275 }
 0x1f9   : > { %v421_v37 = vpop.xlane.xlu1 %420 }
 0x1fa   : > { %v422_v41 = vadd.f32 %v421_v37, %v276_v36 }
 0x1fd   : > { %v497_v38 = vpop.xlane.xlu1 %496 }
 0x1fe   : > { %v498_v42 = vadd.f32 %v497_v38, %v422_v41 }
 0x202   : > { %v573_v39 = vpop.xlane.xlu1 %572 }
 0x203   : > { %v574_v44 = vadd.f32 %v573_v39, %v498_v42 }
 0x206   : > { %v649_v40 = vpop.xlane.xlu1 %648 }
 0x207   : > { %v650_v45 = vadd.f32 %v649_v40, %v574_v44 }
 0x20a   : > { %v725_v43 = vpop.xlane.xlu1 %724 }
 0x20b   : > { %v726_v47 = vadd.f32 %v725_v43, %v650_v45 }
 0x20e   : > { %v801_v46 = vpop.xlane.xlu1 %800 }
 0x20f   : > { %v802_v48 = vadd.f32 %v801_v46, %v726_v47 }
 0x212   : > { %v877_v50 = vpop.xlane.xlu1 %876 }
 0x213   : > { %v878_v51 = vadd.f32 %v877_v50, %v802_v48 }
 0x215   : > { %v884_v52 = vadd.f32 %v883_v49, %v878_v51 }
 0x217   : > { %886 = vst.msk [vmem:[%s220_s28] sm:$0xff] %vm262_vm0, %v884_v52 }
 0x23d   : > { %v346_v53 = vpop.f32.mrb[0].mxu0 }
 0x23e   : > { %v416_v54 = vpop.f32.mrb[0].mxu1  ;;  %v1080_v55 = vpop.f32.mrb[1].mxu0 }
 0x23f   : > { %v417_v56 = vadd.f32 %v416_v54, %v346_v53  ;;  %v1085_v57 = vpop.f32.mrb[1].mxu1 }
 0x241   : > { %v491_v58 = vpop.f32.mrb[2].mxu0 }
 0x242   : > { %v495_v59 = vadd.f32 %v491_v58, %v417_v56  ;;  %v567_v60 = vpop.f32.mrb[2].mxu1  ;;  %v1090_v61 = vpop.f32.mrb[3].mxu0 }
 0x243   : > { %v1095_v62 = vpop.f32.mrb[3].mxu1 }
 0x244   : > { %v571_v63 = vadd.f32 %v567_v60, %v495_v59 }
 0x246   : > { %v643_v0 = vpop.f32.mrb[4].mxu0 }
 0x247   : > { %v647_v1 = vadd.f32 %v643_v0, %v571_v63  ;;  %v719_v2 = vpop.f32.mrb[4].mxu1  ;;  %v1100_v3 = vpop.f32.mrb[5].mxu0 }
 0x248   : > { %v1105_v4 = vpop.f32.mrb[5].mxu1 }
 0x249   : > { %v723_v5 = vadd.f32 %v719_v2, %v647_v1 }
 0x24a   : > { %v795_v6 = vpop.f32.mrb[6].mxu0 }
 0x24b   : > { %v799_v7 = vadd.f32 %v795_v6, %v723_v5  ;;  %v871_v8 = vpop.f32.mrb[6].mxu1  ;;  %v1110_v9 = vpop.f32.mrb[7].mxu0 }
 0x24c   : > { %v1115_v11 = vpop.f32.mrb[7].mxu1 }
 0x24d   : > { %v875_v12 = vadd.f32 %v871_v8, %v799_v7 }
 0x24f   : > { %v880_v13 = vadd.f32 %v879_v10, %v875_v12 }
 0x251   : > { %882 = vst.msk [vmem:[%s1479_s30] sm:$0xff] %vm264_vm2, %v880_v13 }
 0x252   : > { %1227 = shalt.err (!%p1224_p4)
}
 0x253   : > { %s1228_s11 = scalar_lea.hbm %s1490_s19, 128  ;;  %s1232_s22 = scalar_lea.hbm %s1542_s1, 256 }
 0x254   : > { %p1229_p7 = scmp.ne.s32.totalorder %s1490_s19, %s1228_s11  ;;  %p1233_p1 = scmp.lt.u32.totalorder %s1490_s19, %s1542_s1 }
 0x255   : > { %p1234_p3 = scmp.lt.u32.totalorder %s1232_s22, %s1228_s11  ;;  %p1236_p9 = scmp.lt.u32.totalorder %s1228_s11, %s1490_s19 }
 0x256   : > { %p1230_p10 = pnand %p1229_p7, %p1552_p11 }
 0x257   : > { %p1235_p8 = por %p1234_p3, %p1233_p1 }
 0x258   : > { %p1231_p12 = pneg %p1230_p10 }
 0x259   : > { %p1237_p0 = por %p1236_p9, %p1235_p8 }
 0x25b   : > { %p1238_p6 = pnand %p1237_p0, %p1231_p12 }
 0x25d   : > { %1241 = shalt.err (!%p1238_p6)
}
 0x25e   : > { %1118 = dma.vmem_to_hbm [thread:$0]  (%p1552_p11), %s1492_s5, 128, %s1490_s19, %s888_s21  }
 0x25f PF: > { %s927_s29 = sand.u32 1, %s1276_s12   ;;  %p1553_p13 = scmp.ne.s32.totalorder %s1549_s27, 0 }
 0x260   : > { %p1554_p2 = scmp.ge.s32.totalorder %s1296_s17, 2  ;;  %s928_s30 = scalar_lea.sflag [#allocation4], %s927_s29 }
 0x262   : > { %p1125_p5 = pnand %p1554_p2, %p1553_p13 }
 0x264   : > { %1271 = dma.done.wait (!%p1125_p5), %s928_s30, 128  }
 0x265   : > { %1273 = vsyncadd (!%p1125_p5), %s928_s30, 4294967168  ;;  %s20_s17 = sadd.s32 1, %s1296_s17   ;;  %s1555_s12 = smov %s1280_s13 }
 0x266   : > { %p17_p4 = scmp.ge.s32.totalorder %s20_s17, 4   ;;  %s1556_s13 = smov %s1284_s14 }
 0x267   : > { %s1557_s14 = smov %s1381_s26  ;;  %s1558_s15 = smov %s1292_s16 }
 0x268   : > { %s1559_s16 = smov %s1561_s20  ;;  %19 = sbr.rel (!%p17_p4) target bundleno = 6 (0x6), region = 97 }
 0x26f   :  { %947 = vsyncpa [#allocation3], 1 }
 0x270   :  { %949 = vsyncpa [#allocation3 + $0x1], 1 }
 0x271   :  { %950 = vsyncpa [#allocation4], 1 }
 0x272   :  { %952 = vsyncpa [#allocation4 + $0x1], 1 }

</bundles_post_ra>
